<compile_context>
chip_gen: v6e
topology: v6e:2x2x1
jax: 0.10.0
libtpu: 0.0.40
codegen_flags: <defaults>
</compile_context>

<pallas_src>
import jax
import jax.numpy as jnp
from jax.experimental import pallas as pl
from jax.experimental.pallas import tpu as pltpu


def _round_up(a, b):
    return ((a + b - 1) // b) * b


def aux_kernel(xcol_ref, wc_ref, shift_ref, w1_ref, b1_ref, w2_ref, b2_ref,
               out_ref):
    # xcol_ref : [4, TM, 4*Cin]  pixel-major pooling windows (block of samples)
    # wc_ref   : [4*Cin, 128]    tile(conv_w.T, (4,1)) / 4 * bn_scale
    # shift_ref: [1, 128] f32    bn_beta - bn_mean * bn_scale
    # w1_ref   : [4, 128, 128]   per-pixel fc1 blocks (channel x out)
    # b1_ref   : [1, 128] f32
    # w2_ref   : [128, NCp]      fc2.T zero-padded to lane-dense NCp
    # b2_ref   : [1, NCp] f32
    # out_ref  : [TM, NCp] f32
    tm = out_ref.shape[0]
    shift = shift_ref[...]
    acc = jnp.zeros((tm, 128), jnp.float32)
    for p in range(4):  # static unroll over the 4 pooled pixels
        # pool + 1x1 conv + BN scale, all folded into one MXU matmul (K=4*Cin)
        conv = jnp.dot(xcol_ref[p], wc_ref[...],
                       preferred_element_type=jnp.float32)
        act = jnp.maximum(conv + shift, 0.0)               # BN shift + ReLU (f32)
        # fc1 as accumulated per-pixel K=128 matmul (no [N,512] reshape)
        acc = acc + jnp.dot(act.astype(w1_ref.dtype), w1_ref[p],
                            preferred_element_type=jnp.float32)
    h1 = jnp.maximum(acc + b1_ref[...], 0.0)               # fc1 bias + ReLU
    out = jnp.dot(h1.astype(w2_ref.dtype), w2_ref[...],
                  preferred_element_type=jnp.float32) + b2_ref[...]
    out_ref[...] = out.astype(out_ref.dtype)


def simple_inception_aux(x, params, *, matmul_dtype=jnp.float32,
                         block_rows=256):
    """x: NCHW [N, Cin, 4, 4] float32. Returns [N, num_classes] float32."""
    N, C, H, W = x.shape
    assert H == 4 and W == 4, "fc1 expects 512 = 128*2*2 features => 4x4 input"
    assert block_rows % 16 == 0, "block_rows must be a multiple of 16"
    KW = 4 * C

    # ---------------- parameter prep (pure wrapper-side math) ----------------
    wc = params["conv_w"].reshape(128, C)                        # [128, C]
    eps = 0.001
    scale = params["bn_gamma"] / jnp.sqrt(params["bn_var"] + eps)      # [128]
    shift = (params["bn_beta"] - params["bn_mean"] * scale).reshape(1, 128)

    # fold avg-pool (1/4) and BN scale into the conv weight: [4*C, 128],
    # row index = window_element*C + channel (matches xcol feature order).
    wc_fold = jnp.tile(wc.T, (4, 1)) * 0.25 * scale[None, :]

    # fc1 weight split into 4 per-pixel [128(channel), 128(out)] blocks:
    # PyTorch flatten column k = c*4 + pix  ->  w1p[pix, c, out].
    w1p = params["fc1_w"].reshape(128, 128, 4).transpose(2, 1, 0)   # [4,128,128]
    b1 = params["fc1_b"].reshape(1, 128)

    num_classes = params["fc2_w"].shape[0]
    NCp = _round_up(num_classes, 128)                               # lane-dense
    w2p = jnp.zeros((128, NCp), jnp.float32).at[:, :num_classes].set(
        params["fc2_w"].T)
    b2p = jnp.zeros((1, NCp), jnp.float32).at[:, :num_classes].set(
        params["fc2_b"])

    # ---------------- im2col: pixel-major [4, N, 4*C] ----------------
    # x -> (n, c, hp, kh, wp, kw) -> (hp, wp, n, kh, kw, c) -> [4, N, 4*C]
    xcol = (x.reshape(N, C, 2, 2, 2, 2)
              .transpose(2, 4, 0, 3, 5, 1)
              .reshape(4, N, KW)).astype(jnp.float32)

    # pad the sample axis so the grid tiles evenly
    Np = _round_up(N, 16)
    if Np > block_rows:
        Np = _round_up(N, block_rows)
        tm = block_rows
    else:
        tm = Np
    if Np != N:
        xcol = jnp.pad(xcol, ((0, 0), (0, Np - N), (0, 0)))

    # matmul operands (optionally bf16); elementwise work stays in f32
    xcol = xcol.astype(matmul_dtype)
    wc_fold = wc_fold.astype(matmul_dtype)
    w1p = w1p.astype(matmul_dtype)
    w2p = w2p.astype(matmul_dtype)

    grid = (Np // tm,)
    out = pl.pallas_call(
        aux_kernel,
        out_shape=jax.ShapeDtypeStruct((Np, NCp), jnp.float32),
        grid_spec=pltpu.PrefetchScalarGridSpec(
            num_scalar_prefetch=0,
            grid=grid,
            in_specs=[
                # activation stream: one block of samples per grid step
                pl.BlockSpec((4, tm, KW), lambda i: (0, i, 0)),
                # weights / biases: constant index_map -> VMEM-resident
                pl.BlockSpec((KW, 128), lambda i: (0, 0)),
                pl.BlockSpec((1, 128), lambda i: (0, 0)),
                pl.BlockSpec((4, 128, 128), lambda i: (0, 0, 0)),
                pl.BlockSpec((1, 128), lambda i: (0, 0)),
                pl.BlockSpec((128, NCp), lambda i: (0, 0)),
                pl.BlockSpec((1, NCp), lambda i: (0, 0)),
            ],
            out_specs=pl.BlockSpec((tm, NCp), lambda i: (i, 0)),
        ),
        compiler_params=pltpu.CompilerParams(
            dimension_semantics=("parallel",)),
    )(xcol, wc_fold, shift, w1p, b1, w2p, b2p)
    return out[:N, :num_classes]


def reference(x, params):
    """Pure-JAX reference matching PyTorch eval-mode semantics."""
    N, C, H, W = x.shape
    pool = x.reshape(N, C, H // 2, 2, W // 2, 2).mean(axis=(3, 5))   # [N,C,2,2]
    conv = jnp.einsum("oc,ncij->noij", params["conv_w"].reshape(128, C), pool)
    eps = 0.001
    scale = params["bn_gamma"] / jnp.sqrt(params["bn_var"] + eps)
    shift = params["bn_beta"] - params["bn_mean"] * scale
    act = jnp.maximum(
        conv * scale[None, :, None, None] + shift[None, :, None, None], 0.0)
    flat = act.reshape(N, -1)                                        # [N, 512]
    h1 = jnp.maximum(flat @ params["fc1_w"].T + params["fc1_b"], 0.0)
    return h1 @ params["fc2_w"].T + params["fc2_b"]


if __name__ == "__main__":
    N, Cin, S = 2, 4, 4          # batch, in_channels, spatial (4x4 -> pool -> 2x2)
    num_classes = 10

    key = jax.random.PRNGKey(0)
    ks = jax.random.split(key, 11)
    x = jax.random.normal(ks[0], (N, Cin, S, S), dtype=jnp.float32)

    params = {
        "conv_w":   0.2 * jax.random.normal(ks[1], (128, Cin, 1, 1), jnp.float32),
        "bn_gamma": 1.0 + 0.1 * jax.random.normal(ks[2], (128,), jnp.float32),
        "bn_beta":  0.1 * jax.random.normal(ks[3], (128,), jnp.float32),
        "bn_mean":  0.1 * jax.random.normal(ks[4], (128,), jnp.float32),
        "bn_var":   jnp.abs(jax.random.normal(ks[5], (128,), jnp.float32)) + 0.5,
        "fc1_w":    0.05 * jax.random.normal(ks[6], (128, 512), jnp.float32),
        "fc1_b":    0.05 * jax.random.normal(ks[7], (128,), jnp.float32),
        "fc2_w":    0.1 * jax.random.normal(ks[8], (num_classes, 128), jnp.float32),
        "fc2_b":    0.1 * jax.random.normal(ks[9], (num_classes,), jnp.float32),
    }

    ref = reference(x, params)

    # --- f32 matmul operands (tight check) ---
    out = jax.block_until_ready(simple_inception_aux(x, params))
    assert out.shape == (N, num_classes)
    assert jnp.allclose(out, ref, atol=1e-4, rtol=1e-4), (
        f"f32 max abs err {jnp.max(jnp.abs(out - ref))}")

    # --- bf16 matmul operands, f32 accumulation (v6e/v7x traffic saver) ---
    out_bf16 = jax.block_until_ready(
        simple_inception_aux(x, params, matmul_dtype=jnp.bfloat16))
    assert jnp.allclose(out_bf16, ref, atol=5e-2, rtol=5e-2), (
        f"bf16 max abs err {jnp.max(jnp.abs(out_bf16 - ref))}")

    # --- multi-block grid path (padding + >1 grid steps, weights resident) ---
    Nbig = 20
    xb = jax.random.normal(ks[10], (Nbig, Cin, S, S), dtype=jnp.float32)
    outb = jax.block_until_ready(
        simple_inception_aux(xb, params, block_rows=16))
    refb = reference(xb, params)
    assert outb.shape == (Nbig, num_classes)
    assert jnp.allclose(outb, refb, atol=1e-4, rtol=1e-4), (
        f"grid max abs err {jnp.max(jnp.abs(outb - refb))}")

    print("KERNEL_OK")
</pallas_src>

<mosaic_0001>
module attributes {stable_mosaic.version = 11 : i64} {
  func.func @aux_kernel(%arg0: i32, %arg1: memref<4x16x16xf32, #tpu.memory_space<vmem>>, %arg2: memref<16x128xf32, #tpu.memory_space<vmem>>, %arg3: memref<1x128xf32, #tpu.memory_space<vmem>>, %arg4: memref<4x128x128xf32, #tpu.memory_space<vmem>>, %arg5: memref<1x128xf32, #tpu.memory_space<vmem>>, %arg6: memref<128x128xf32, #tpu.memory_space<vmem>>, %arg7: memref<1x128xf32, #tpu.memory_space<vmem>>, %arg8: memref<16x128xf32, #tpu.memory_space<vmem>>) attributes {dimension_semantics = [#tpu.dimension_semantics<parallel>], iteration_bounds = array<i64: 1>, scalar_prefetch = 0 : i64, scratch_operands = 0 : i64, tpu.core_type = #tpu.core_type<tc>, window_params = [{transform_indices = @transform_0, window_bounds = array<i64: 4, 16, 16>}, {pipeline_mode = #tpu.pipeline_mode<synchronous>, transform_indices = @transform_1, window_bounds = array<i64: 16, 128>}, {pipeline_mode = #tpu.pipeline_mode<synchronous>, transform_indices = @transform_2, window_bounds = array<i64: 1, 128>}, {pipeline_mode = #tpu.pipeline_mode<synchronous>, transform_indices = @transform_3, window_bounds = array<i64: 4, 128, 128>}, {pipeline_mode = #tpu.pipeline_mode<synchronous>, transform_indices = @transform_4, window_bounds = array<i64: 1, 128>}, {pipeline_mode = #tpu.pipeline_mode<synchronous>, transform_indices = @transform_5, window_bounds = array<i64: 128, 128>}, {pipeline_mode = #tpu.pipeline_mode<synchronous>, transform_indices = @transform_6, window_bounds = array<i64: 1, 128>}, {transform_indices = @transform_7, window_bounds = array<i64: 16, 128>}]} {
    %c0 = arith.constant 0 : index
    %c0_0 = arith.constant 0 : index
    %0 = vector.load %arg3[%c0, %c0_0] : memref<1x128xf32, #tpu.memory_space<vmem>>, vector<1x128xf32>
    %cst = arith.constant 0.000000e+00 : f32
    %1 = vector.broadcast %cst : f32 to vector<16x128xf32>
    %c0_1 = arith.constant 0 : index
    %c0_2 = arith.constant 0 : index
    %c0_3 = arith.constant 0 : index
    %2 = vector.load %arg1[%c0_1, %c0_2, %c0_3] : memref<4x16x16xf32, #tpu.memory_space<vmem>>, vector<1x16x16xf32>
    %3 = vector.shape_cast %2 : vector<1x16x16xf32> to vector<16x16xf32>
    %c0_4 = arith.constant 0 : index
    %c0_5 = arith.constant 0 : index
    %4 = vector.load %arg2[%c0_4, %c0_5] : memref<16x128xf32, #tpu.memory_space<vmem>>, vector<16x128xf32>
    %cst_6 = arith.constant dense<0.000000e+00> : vector<16x128xf32>
    %5 = tpu.matmul %3, %4, %cst_6 {dimension_numbers = #tpu.dot_dimension_numbers<[1], [0], [0], [1], [0, 0, 1, 1], [], []>} : vector<16x16xf32>, vector<16x128xf32>, vector<16x128xf32> -> vector<16x128xf32>
    %6 = vector.broadcast %0 : vector<1x128xf32> to vector<16x128xf32>
    %7 = arith.addf %5, %6 : vector<16x128xf32>
    %cst_7 = arith.constant 0.000000e+00 : f32
    %8 = vector.broadcast %cst_7 : f32 to vector<16x128xf32>
    %9 = arith.maximumf %7, %8 : vector<16x128xf32>
    %c0_8 = arith.constant 0 : index
    %c0_9 = arith.constant 0 : index
    %c0_10 = arith.constant 0 : index
    %10 = vector.load %arg4[%c0_8, %c0_9, %c0_10] : memref<4x128x128xf32, #tpu.memory_space<vmem>>, vector<1x128x128xf32>
    %11 = vector.shape_cast %10 : vector<1x128x128xf32> to vector<128x128xf32>
    %cst_11 = arith.constant dense<0.000000e+00> : vector<16x128xf32>
    %12 = tpu.matmul %9, %11, %cst_11 {dimension_numbers = #tpu.dot_dimension_numbers<[1], [0], [0], [1], [0, 0, 1, 1], [], []>} : vector<16x128xf32>, vector<128x128xf32>, vector<16x128xf32> -> vector<16x128xf32>
    %13 = arith.addf %1, %12 : vector<16x128xf32>
    %c1 = arith.constant 1 : index
    %c0_12 = arith.constant 0 : index
    %c0_13 = arith.constant 0 : index
    %14 = vector.load %arg1[%c1, %c0_12, %c0_13] : memref<4x16x16xf32, #tpu.memory_space<vmem>>, vector<1x16x16xf32>
    %15 = vector.shape_cast %14 : vector<1x16x16xf32> to vector<16x16xf32>
    %c0_14 = arith.constant 0 : index
    %c0_15 = arith.constant 0 : index
    %16 = vector.load %arg2[%c0_14, %c0_15] : memref<16x128xf32, #tpu.memory_space<vmem>>, vector<16x128xf32>
    %cst_16 = arith.constant dense<0.000000e+00> : vector<16x128xf32>
    %17 = tpu.matmul %15, %16, %cst_16 {dimension_numbers = #tpu.dot_dimension_numbers<[1], [0], [0], [1], [0, 0, 1, 1], [], []>} : vector<16x16xf32>, vector<16x128xf32>, vector<16x128xf32> -> vector<16x128xf32>
    %18 = vector.broadcast %0 : vector<1x128xf32> to vector<16x128xf32>
    %19 = arith.addf %17, %18 : vector<16x128xf32>
    %cst_17 = arith.constant 0.000000e+00 : f32
    %20 = vector.broadcast %cst_17 : f32 to vector<16x128xf32>
    %21 = arith.maximumf %19, %20 : vector<16x128xf32>
    %c1_18 = arith.constant 1 : index
    %c0_19 = arith.constant 0 : index
    %c0_20 = arith.constant 0 : index
    %22 = vector.load %arg4[%c1_18, %c0_19, %c0_20] : memref<4x128x128xf32, #tpu.memory_space<vmem>>, vector<1x128x128xf32>
    %23 = vector.shape_cast %22 : vector<1x128x128xf32> to vector<128x128xf32>
    %cst_21 = arith.constant dense<0.000000e+00> : vector<16x128xf32>
    %24 = tpu.matmul %21, %23, %cst_21 {dimension_numbers = #tpu.dot_dimension_numbers<[1], [0], [0], [1], [0, 0, 1, 1], [], []>} : vector<16x128xf32>, vector<128x128xf32>, vector<16x128xf32> -> vector<16x128xf32>
    %25 = arith.addf %13, %24 : vector<16x128xf32>
    %c2 = arith.constant 2 : index
    %c0_22 = arith.constant 0 : index
    %c0_23 = arith.constant 0 : index
    %26 = vector.load %arg1[%c2, %c0_22, %c0_23] : memref<4x16x16xf32, #tpu.memory_space<vmem>>, vector<1x16x16xf32>
    %27 = vector.shape_cast %26 : vector<1x16x16xf32> to vector<16x16xf32>
    %c0_24 = arith.constant 0 : index
    %c0_25 = arith.constant 0 : index
    %28 = vector.load %arg2[%c0_24, %c0_25] : memref<16x128xf32, #tpu.memory_space<vmem>>, vector<16x128xf32>
    %cst_26 = arith.constant dense<0.000000e+00> : vector<16x128xf32>
    %29 = tpu.matmul %27, %28, %cst_26 {dimension_numbers = #tpu.dot_dimension_numbers<[1], [0], [0], [1], [0, 0, 1, 1], [], []>} : vector<16x16xf32>, vector<16x128xf32>, vector<16x128xf32> -> vector<16x128xf32>
    %30 = vector.broadcast %0 : vector<1x128xf32> to vector<16x128xf32>
    %31 = arith.addf %29, %30 : vector<16x128xf32>
    %cst_27 = arith.constant 0.000000e+00 : f32
    %32 = vector.broadcast %cst_27 : f32 to vector<16x128xf32>
    %33 = arith.maximumf %31, %32 : vector<16x128xf32>
    %c2_28 = arith.constant 2 : index
    %c0_29 = arith.constant 0 : index
    %c0_30 = arith.constant 0 : index
    %34 = vector.load %arg4[%c2_28, %c0_29, %c0_30] : memref<4x128x128xf32, #tpu.memory_space<vmem>>, vector<1x128x128xf32>
    %35 = vector.shape_cast %34 : vector<1x128x128xf32> to vector<128x128xf32>
    %cst_31 = arith.constant dense<0.000000e+00> : vector<16x128xf32>
    %36 = tpu.matmul %33, %35, %cst_31 {dimension_numbers = #tpu.dot_dimension_numbers<[1], [0], [0], [1], [0, 0, 1, 1], [], []>} : vector<16x128xf32>, vector<128x128xf32>, vector<16x128xf32> -> vector<16x128xf32>
    %37 = arith.addf %25, %36 : vector<16x128xf32>
    %c3 = arith.constant 3 : index
    %c0_32 = arith.constant 0 : index
    %c0_33 = arith.constant 0 : index
    %38 = vector.load %arg1[%c3, %c0_32, %c0_33] : memref<4x16x16xf32, #tpu.memory_space<vmem>>, vector<1x16x16xf32>
    %39 = vector.shape_cast %38 : vector<1x16x16xf32> to vector<16x16xf32>
    %c0_34 = arith.constant 0 : index
    %c0_35 = arith.constant 0 : index
    %40 = vector.load %arg2[%c0_34, %c0_35] : memref<16x128xf32, #tpu.memory_space<vmem>>, vector<16x128xf32>
    %cst_36 = arith.constant dense<0.000000e+00> : vector<16x128xf32>
    %41 = tpu.matmul %39, %40, %cst_36 {dimension_numbers = #tpu.dot_dimension_numbers<[1], [0], [0], [1], [0, 0, 1, 1], [], []>} : vector<16x16xf32>, vector<16x128xf32>, vector<16x128xf32> -> vector<16x128xf32>
    %42 = vector.broadcast %0 : vector<1x128xf32> to vector<16x128xf32>
    %43 = arith.addf %41, %42 : vector<16x128xf32>
    %cst_37 = arith.constant 0.000000e+00 : f32
    %44 = vector.broadcast %cst_37 : f32 to vector<16x128xf32>
    %45 = arith.maximumf %43, %44 : vector<16x128xf32>
    %c3_38 = arith.constant 3 : index
    %c0_39 = arith.constant 0 : index
    %c0_40 = arith.constant 0 : index
    %46 = vector.load %arg4[%c3_38, %c0_39, %c0_40] : memref<4x128x128xf32, #tpu.memory_space<vmem>>, vector<1x128x128xf32>
    %47 = vector.shape_cast %46 : vector<1x128x128xf32> to vector<128x128xf32>
    %cst_41 = arith.constant dense<0.000000e+00> : vector<16x128xf32>
    %48 = tpu.matmul %45, %47, %cst_41 {dimension_numbers = #tpu.dot_dimension_numbers<[1], [0], [0], [1], [0, 0, 1, 1], [], []>} : vector<16x128xf32>, vector<128x128xf32>, vector<16x128xf32> -> vector<16x128xf32>
    %49 = arith.addf %37, %48 : vector<16x128xf32>
    %c0_42 = arith.constant 0 : index
    %c0_43 = arith.constant 0 : index
    %50 = vector.load %arg5[%c0_42, %c0_43] : memref<1x128xf32, #tpu.memory_space<vmem>>, vector<1x128xf32>
    %51 = vector.broadcast %50 : vector<1x128xf32> to vector<16x128xf32>
    %52 = arith.addf %49, %51 : vector<16x128xf32>
    %cst_44 = arith.constant 0.000000e+00 : f32
    %53 = vector.broadcast %cst_44 : f32 to vector<16x128xf32>
    %54 = arith.maximumf %52, %53 : vector<16x128xf32>
    %c0_45 = arith.constant 0 : index
    %c0_46 = arith.constant 0 : index
    %55 = vector.load %arg6[%c0_45, %c0_46] : memref<128x128xf32, #tpu.memory_space<vmem>>, vector<128x128xf32>
    %cst_47 = arith.constant dense<0.000000e+00> : vector<16x128xf32>
    %56 = tpu.matmul %54, %55, %cst_47 {dimension_numbers = #tpu.dot_dimension_numbers<[1], [0], [0], [1], [0, 0, 1, 1], [], []>} : vector<16x128xf32>, vector<128x128xf32>, vector<16x128xf32> -> vector<16x128xf32>
    %c0_48 = arith.constant 0 : index
    %c0_49 = arith.constant 0 : index
    %57 = vector.load %arg7[%c0_48, %c0_49] : memref<1x128xf32, #tpu.memory_space<vmem>>, vector<1x128xf32>
    %58 = vector.broadcast %57 : vector<1x128xf32> to vector<16x128xf32>
    %59 = arith.addf %56, %58 : vector<16x128xf32>
    %c0_50 = arith.constant 0 : index
    %c0_51 = arith.constant 0 : index
    %60 = vector.load %arg8[%c0_50, %c0_51] : memref<16x128xf32, #tpu.memory_space<vmem>>, vector<16x128xf32>
    tpu.vector_store %arg8[%c0_50, %c0_51], %59 {strides = array<i32>} : memref<16x128xf32, #tpu.memory_space<vmem>>, vector<16x128xf32>,
    return
  }
  func.func @transform_0(%arg0: i32) -> (i32, i32, i32) {
    %c0_i32 = arith.constant 0 : i32
    %c0_i32_0 = arith.constant 0 : i32
    %c0_i32_1 = arith.constant 0 : i32
    return %c0_i32, %arg0, %c0_i32_0 : i32, i32, i32
  }
  func.func @transform_1(%arg0: i32) -> (i32, i32) {
    %c0_i32 = arith.constant 0 : i32
    %c0_i32_0 = arith.constant 0 : i32
    %c0_i32_1 = arith.constant 0 : i32
    return %c0_i32, %c0_i32_0 : i32, i32
  }
  func.func @transform_2(%arg0: i32) -> (i32, i32) {
    %c0_i32 = arith.constant 0 : i32
    %c0_i32_0 = arith.constant 0 : i32
    %c0_i32_1 = arith.constant 0 : i32
    return %c0_i32, %c0_i32_0 : i32, i32
  }
  func.func @transform_3(%arg0: i32) -> (i32, i32, i32) {
    %c0_i32 = arith.constant 0 : i32
    %c0_i32_0 = arith.constant 0 : i32
    %c0_i32_1 = arith.constant 0 : i32
    %c0_i32_2 = arith.constant 0 : i32
    return %c0_i32, %c0_i32_0, %c0_i32_1 : i32, i32, i32
  }
  func.func @transform_4(%arg0: i32) -> (i32, i32) {
    %c0_i32 = arith.constant 0 : i32
    %c0_i32_0 = arith.constant 0 : i32
    %c0_i32_1 = arith.constant 0 : i32
    return %c0_i32, %c0_i32_0 : i32, i32
  }
  func.func @transform_5(%arg0: i32) -> (i32, i32) {
    %c0_i32 = arith.constant 0 : i32
    %c0_i32_0 = arith.constant 0 : i32
    %c0_i32_1 = arith.constant 0 : i32
    return %c0_i32, %c0_i32_0 : i32, i32
  }
  func.func @transform_6(%arg0: i32) -> (i32, i32) {
    %c0_i32 = arith.constant 0 : i32
    %c0_i32_0 = arith.constant 0 : i32
    %c0_i32_1 = arith.constant 0 : i32
    return %c0_i32, %c0_i32_0 : i32, i32
  }
  func.func @transform_7(%arg0: i32) -> (i32, i32) {
    %c0_i32 = arith.constant 0 : i32
    %c0_i32_0 = arith.constant 0 : i32
    return %arg0, %c0_i32 : i32, i32
  }
}

</mosaic_0001>

<bundles_post_ra>
// kernel: tpu_custom_call.1
= control target key start
LH: loop header
LB: loop body
LE: loop exit
PB: predicated region body
PF: predicated region fallthrough
CT: control target
= control target key end

     0   :  { %12 = vsyncpa [#allocation3], 0  ;;  %s1501_s0 = inlined_call_operand.hbm [shape: f32[4,16,16], index: 0, kind: input, shape index: {}]   ;;  %s1502_s1 = inlined_call_operand.hbm [shape: f32[16,128], index: 1, kind: input, shape index: {}]   ;;  %s1503_s2 = inlined_call_operand.vmem [shape: f32[1,128], index: 2, kind: input, shape index: {}]   ;;  %s1504_s3 = inlined_call_operand.hbm [shape: f32[4,128,128], index: 3, kind: input, shape index: {}]   ;;  %s1505_s4 = inlined_call_operand.vmem [shape: f32[1,128], index: 4, kind: input, shape index: {}]   ;;  %s1506_s5 = inlined_call_operand.hbm [shape: f32[128,128], index: 5, kind: input, shape index: {}]   ;;  %s1507_s6 = inlined_call_operand.vmem [shape: f32[1,128], index: 6, kind: input, shape index: {}]   ;;  %s1508_s7 = inlined_call_operand.hbm [shape: f32[16,128], index: 7, kind: output, shape index: {}]  }
   0x1   :  { %13 = vsyncpa [#allocation6], 0 }
   0x2   :  { %14 = vsyncpa [#allocation9], 0 }
   0x3   :  { %15 = vsyncpa [#allocation4], 0  ;;  %s1371_s24 = smov [#allocation5]   ;;  %s1372_s26 = smov [#allocation2]  }
   0x4   :  { %s33_s25 = sshll.u32 %s1371_s24, 4  ;;  %s21_s27 = sshll.u32 %s1372_s26, 4  ;;  %s34_s25 = int_to_ptr.vmem [resolvable:$true] %s33_s25  ;;  %s22_s27 = int_to_ptr.vmem [resolvable:$true] %s21_s27 }
   0x5   :  { %s1271_s28 = scalar_lea.vmem %s34_s25, 256  ;;  %p1276_p1 = scmp.lt.s32.totalorder %s34_s25, %s34_s25 }
   0x6   :  { %p1272_p0 = scmp.ne.s32.totalorder %s34_s25, %s1271_s28  ;;  %p1277_p2 = scmp.lt.s32.totalorder %s1271_s28, %s1271_s28 }
   0x8   :  { %p1278_p3 = por %p1277_p2, %p1276_p1 }
   0xa   :  { %p1279_p4 = pnand %p1278_p3, %p1272_p0 }
   0xc   :  { %1282 = shalt.err (!%p1279_p4)
}
   0xd   :  { %s1373_s29 = smov 128   ;;  %s1374_s30 = smov 8  }
   0xe   :  { %39 = dma.hbm_to_vmem [thread:$0]  %s1502_s1, 256, %s34_s25, [#allocation6], %s1373_s29, %s1373_s29, %s1374_s30  }
   0xf   :  { %s1291_s10 = scalar_lea.vmem %s22_s27, 1024  ;;  %p1296_p6 = scmp.lt.s32.totalorder %s22_s27, %s22_s27 }
  0x10   :  { %p1292_p5 = scmp.ne.s32.totalorder %s22_s27, %s1291_s10  ;;  %p1297_p7 = scmp.lt.s32.totalorder %s1291_s10, %s1291_s10 }
  0x12   :  { %p1298_p8 = por %p1297_p7, %p1296_p6 }
  0x14   :  { %p1299_p9 = pnand %p1298_p8, %p1292_p5 }
  0x16   :  { %1302 = shalt.err (!%p1299_p9)
}
  0x17   :  { %27 = dma.hbm_to_vmem [thread:$0]  %s1501_s0, 1024, %s22_s27, [#allocation3], %s1373_s29, %s1373_s29, %s1374_s30  }
  0x18   :  { %s1375_s13 = smov [#allocation7]   ;;  %s1376_s15 = smov [#allocation8]  }
  0x19   :  { %s47_s14 = sshll.u32 %s1375_s13, 4  ;;  %s61_s16 = sshll.u32 %s1376_s15, 4  ;;  %s48_s14 = int_to_ptr.vmem [resolvable:$true] %s47_s14  ;;  %s62_s16 = int_to_ptr.vmem [resolvable:$true] %s61_s16 }
  0x1a   :  { %s1311_s1 = scalar_lea.vmem %s48_s14, 8192  ;;  %p1316_p11 = scmp.lt.s32.totalorder %s48_s14, %s48_s14 }
  0x1b   :  { %p1312_p10 = scmp.ne.s32.totalorder %s48_s14, %s1311_s1  ;;  %p1317_p12 = scmp.lt.s32.totalorder %s1311_s1, %s1311_s1 }
  0x1d   :  { %p1318_p13 = por %p1317_p12, %p1316_p11 }
  0x1f   :  { %p1319_p0 = pnand %p1318_p13, %p1312_p10 }
  0x21   :  { %1322 = shalt.err (!%p1319_p0)
}
  0x22   :  { %53 = dma.hbm_to_vmem [thread:$0]  %s1504_s3, 8192, %s48_s14, [#allocation6], %s1373_s29, %s1373_s29, %s1374_s30  }
  0x23   :  { %s1331_s0 = scalar_lea.vmem %s62_s16, 2048  ;;  %p1336_p2 = scmp.lt.s32.totalorder %s62_s16, %s62_s16 }
  0x24   :  { %p1332_p1 = scmp.ne.s32.totalorder %s62_s16, %s1331_s0  ;;  %p1337_p3 = scmp.lt.s32.totalorder %s1331_s0, %s1331_s0 }
  0x26   :  { %p1338_p4 = por %p1337_p3, %p1336_p2 }
  0x28   :  { %p1339_p5 = pnand %p1338_p4, %p1332_p1 }
  0x2a   :  { %1342 = shalt.err (!%p1339_p5)
}
  0x2b   :  { %67 = dma.hbm_to_vmem [thread:$0]  %s1506_s5, 2048, %s62_s16, [#allocation9], %s1373_s29, %s1373_s29, %s1374_s30  }
  0x2c   :  { %1363 = dma.done.wait [#allocation3], 1024  }
  0x2d   :  { %1364 = vsyncadd [#allocation3], 4294966272 }
  0x2e   :  { %1365 = dma.done.wait [#allocation6], 8448  }
  0x2f   :  { %1366 = vsyncadd [#allocation6], 4294958848 }
  0x30   :  { %1367 = dma.done.wait [#allocation9], 2048  }
  0x31   :  { %1368 = vsyncadd [#allocation9], 4294965248  ;;  %vm93_vm0 = vcmask 130048   ;;  %v1442_v0 = vld [vmem:[#allocation5 + $0x8] sm:$0xff]  ;;  %v1444_v1 = vld [vmem:[#allocation5] sm:$0xff]  ;;  %s1377_s24 = smov [#allocation10]  }
  0x32   :  { %v83_v2 = vld [vmem:[#allocation2] sm:$0xff]  ;;  %1053 = vmatprep.subr.mxu0 %v1442_v0  ;;  %v84_v3 = vld [vmem:[#allocation2 + $0x8] sm:$0xff]  ;;  %v194_v5 = vld [vmem:[#allocation2 + $0x10] sm:$0xff]  ;;  %s922_s25 = sshll.u32 %s1377_s24, 4  ;;  %s923_s25 = int_to_ptr.vmem [resolvable:$true] %s922_s25 }
  0x33   :  { %1057 = vmatprep.mubr.msk.f32.mxu0 %vm93_vm0, %v83_v2  ;;  %1054 = vmatpush3.msra.mxu0 %v1442_v0  ;;  %v192_v4 = vld [vmem:[#allocation7 + $0x78] sm:$0xff]  ;;  %v191_v6 = vld [vmem:[#allocation7 + $0x70] sm:$0xff]  ;;  %v195_v7 = vld [vmem:[#allocation2 + $0x18] sm:$0xff]  ;;  %p1348_p7 = scmp.lt.s32.totalorder %s923_s25, %s923_s25 }
  0x34   :  { %1055 = vmatprep.subr.mxu0 %v1444_v1  ;;  %1102 = vmatprep.subr.mxu1 %v192_v4  ;;  %v295_v8 = vld [vmem:[#allocation7 + $0xf8] sm:$0xff]  ;;  %v190_v9 = vld [vmem:[#allocation7 + $0x68] sm:$0xff]  ;;  %v294_v10 = vld [vmem:[#allocation7 + $0xf0] sm:$0xff] }
  0x35   :  { %1056 = vmatpush3.msra.mxu0 %v1444_v1  ;;  %1103 = vmatpush3.msra.mxu1 %v192_v4  ;;  %v189_v11 = vld [vmem:[#allocation7 + $0x60] sm:$0xff]  ;;  %v293_v12 = vld [vmem:[#allocation7 + $0xe8] sm:$0xff]  ;;  %v188_v13 = vld [vmem:[#allocation7 + $0x58] sm:$0xff] }
  0x36   :  { %1058 = vmatmul.mubr.msk.f32.vlgmr.msra.gmra.mxu0 %vm93_vm0, %v84_v3  ;;  %1060 = vmatprep.subr.mxu0 %v1442_v0  ;;  %v292_v14 = vld [vmem:[#allocation7 + $0xe0] sm:$0xff]  ;;  %v187_v15 = vld [vmem:[#allocation7 + $0x50] sm:$0xff]  ;;  %v291_v16 = vld [vmem:[#allocation7 + $0xd8] sm:$0xff] }
  0x37   :  { %1061 = vmatpush3.msra.mxu0 %v1442_v0  ;;  %1064 = vmatprep.mubr.msk.f32.mxu0 %vm93_vm0, %v194_v5  ;;  %v186_v17 = vld [vmem:[#allocation7 + $0x48] sm:$0xff]  ;;  %v290_v18 = vld [vmem:[#allocation7 + $0xd0] sm:$0xff]  ;;  %v185_v19 = vld [vmem:[#allocation7 + $0x40] sm:$0xff] }
  0x38   :  { %1062 = vmatprep.subr.mxu0 %v1444_v1  ;;  %1104 = vmatprep.subr.mxu1 %v191_v6  ;;  %v289_v20 = vld [vmem:[#allocation7 + $0xc8] sm:$0xff]  ;;  %v184_v21 = vld [vmem:[#allocation7 + $0x38] sm:$0xff]  ;;  %v288_v22 = vld [vmem:[#allocation7 + $0xc0] sm:$0xff] }
  0x39   :  { %1063 = vmatpush3.msra.mxu0 %v1444_v1  ;;  %1105 = vmatpush3.msra.mxu1 %v191_v6  ;;  %v183_v23 = vld [vmem:[#allocation7 + $0x30] sm:$0xff]  ;;  %v287_v24 = vld [vmem:[#allocation7 + $0xb8] sm:$0xff]  ;;  %v182_v25 = vld [vmem:[#allocation7 + $0x28] sm:$0xff] }
  0x3a   :  { %1065 = vmatmul.mubr.msk.f32.vlgmr.msra.gmra.mxu0 %vm93_vm0, %v195_v7  ;;  %1067 = vmatprep.subr.mxu0 %v295_v8  ;;  %v286_v26 = vld [vmem:[#allocation7 + $0xb0] sm:$0xff]  ;;  %v181_v27 = vld [vmem:[#allocation7 + $0x20] sm:$0xff]  ;;  %v285_v28 = vld [vmem:[#allocation7 + $0xa8] sm:$0xff] }
  0x3b   :  { %1106 = vmatprep.subr.mxu1 %v190_v9  ;;  %1068 = vmatpush3.msra.mxu0 %v295_v8  ;;  %v180_v29 = vld [vmem:[#allocation7 + $0x18] sm:$0xff]  ;;  %v284_v30 = vld [vmem:[#allocation7 + $0xa0] sm:$0xff]  ;;  %v179_v31 = vld [vmem:[#allocation7 + $0x10] sm:$0xff] }
  0x3c   :  { %1107 = vmatpush3.msra.mxu1 %v190_v9  ;;  %1069 = vmatprep.subr.mxu0 %v294_v10  ;;  %v283_v32 = vld [vmem:[#allocation7 + $0x98] sm:$0xff]  ;;  %v178_v33 = vld [vmem:[#allocation7 + $0x8] sm:$0xff]  ;;  %v282_v34 = vld [vmem:[#allocation7 + $0x90] sm:$0xff] }
  0x3d   :  { %1108 = vmatprep.subr.mxu1 %v189_v11  ;;  %1070 = vmatpush3.msra.mxu0 %v294_v10  ;;  %v177_v35 = vld [vmem:[#allocation7] sm:$0xff]  ;;  %v281_v36 = vld [vmem:[#allocation7 + $0x88] sm:$0xff]  ;;  %v548_v38 = vld [vmem:[#allocation7 + $0x178] sm:$0xff] }
  0x3e   :  { %1109 = vmatpush3.msra.mxu1 %v189_v11  ;;  %1071 = vmatprep.subr.mxu0 %v293_v12  ;;  %v280_v37 = vld [vmem:[#allocation7 + $0x80] sm:$0xff]  ;;  %v1462_v39 = vld [vmem:[%s1503_s2] ss:$0 sm:$0xff]  ;;  %v546_v52 = vld [vmem:[#allocation7 + $0x168] sm:$0xff] }
  0x3f   :  { %1110 = vmatprep.subr.mxu1 %v188_v13  ;;  %1072 = vmatpush3.msra.mxu0 %v293_v12  ;;  %v547_v50 = vld [vmem:[#allocation7 + $0x170] sm:$0xff]  ;;  %v545_v55 = vld [vmem:[#allocation7 + $0x160] sm:$0xff]  ;;  %v448_v56 = vld [vmem:[#allocation2 + $0x28] sm:$0xff] }
  0x40   :  { %1111 = vmatpush3.msra.mxu1 %v188_v13  ;;  %1073 = vmatprep.subr.mxu0 %v292_v14  ;;  %v447_v54 = vld [vmem:[#allocation2 + $0x20] sm:$0xff]  ;;  %v627_v57 = vld [vmem:[#allocation2 + $0x30] sm:$0xff]  ;;  %v544_v58 = vld [vmem:[#allocation7 + $0x158] sm:$0xff] }
  0x41   :  { %1112 = vmatprep.subr.mxu1 %v187_v15  ;;  %1074 = vmatpush3.msra.mxu0 %v292_v14  ;;  %v628_v59 = vld [vmem:[#allocation2 + $0x38] sm:$0xff]  ;;  %v728_v60 = vld [vmem:[#allocation7 + $0x1f8] sm:$0xff]  ;;  %v727_v61 = vld [vmem:[#allocation7 + $0x1f0] sm:$0xff] }
  0x42   :  { %1113 = vmatpush3.msra.mxu1 %v187_v15  ;;  %1075 = vmatprep.subr.mxu0 %v291_v16  ;;  %v543_v62 = vld [vmem:[#allocation7 + $0x150] sm:$0xff]  ;;  %v726_v63 = vld [vmem:[#allocation7 + $0x1e8] sm:$0xff]  ;;  %v541_v3 = vld [vmem:[#allocation7 + $0x140] sm:$0xff] }
  0x43   :  { %1114 = vmatprep.subr.mxu1 %v186_v17  ;;  %1076 = vmatpush3.msra.mxu0 %v291_v16  ;;  %v542_v2 = vld [vmem:[#allocation7 + $0x148] sm:$0xff]  ;;  %v723_v4 = vld [vmem:[#allocation7 + $0x1d0] sm:$0xff]  ;;  %v540_v5 = vld [vmem:[#allocation7 + $0x138] sm:$0xff] }
  0x44   :  { %1115 = vmatpush3.msra.mxu1 %v186_v17  ;;  %1077 = vmatprep.subr.mxu0 %v290_v18  ;;  %v722_v6 = vld [vmem:[#allocation7 + $0x1c8] sm:$0xff]  ;;  %v539_v7 = vld [vmem:[#allocation7 + $0x130] sm:$0xff]  ;;  %v721_v8 = vld [vmem:[#allocation7 + $0x1c0] sm:$0xff] }
  0x45   :  { %1116 = vmatprep.subr.mxu1 %v185_v19  ;;  %1078 = vmatpush3.msra.mxu0 %v290_v18  ;;  %v538_v9 = vld [vmem:[#allocation7 + $0x128] sm:$0xff]  ;;  %v720_v10 = vld [vmem:[#allocation7 + $0x1b8] sm:$0xff]  ;;  %v537_v11 = vld [vmem:[#allocation7 + $0x120] sm:$0xff] }
  0x46   :  { %1117 = vmatpush3.msra.mxu1 %v185_v19  ;;  %1079 = vmatprep.subr.mxu0 %v289_v20  ;;  %v719_v12 = vld [vmem:[#allocation7 + $0x1b0] sm:$0xff]  ;;  %v536_v13 = vld [vmem:[#allocation7 + $0x118] sm:$0xff]  ;;  %v718_v14 = vld [vmem:[#allocation7 + $0x1a8] sm:$0xff] }
  0x47   :  { %1118 = vmatprep.subr.mxu1 %v184_v21  ;;  %1080 = vmatpush3.msra.mxu0 %v289_v20  ;;  %v535_v15 = vld [vmem:[#allocation7 + $0x110] sm:$0xff]  ;;  %v717_v16 = vld [vmem:[#allocation7 + $0x1a0] sm:$0xff]  ;;  %v534_v17 = vld [vmem:[#allocation7 + $0x108] sm:$0xff] }
  0x48   :  { %1119 = vmatpush3.msra.mxu1 %v184_v21  ;;  %1081 = vmatprep.subr.mxu0 %v288_v22  ;;  %v716_v18 = vld [vmem:[#allocation7 + $0x198] sm:$0xff]  ;;  %v533_v19 = vld [vmem:[#allocation7 + $0x100] sm:$0xff]  ;;  %v715_v20 = vld [vmem:[#allocation7 + $0x190] sm:$0xff] }
  0x49   :  { %1120 = vmatprep.subr.mxu1 %v183_v23  ;;  %1082 = vmatpush3.msra.mxu0 %v288_v22  ;;  %v714_v21 = vld [vmem:[#allocation7 + $0x188] sm:$0xff]  ;;  %v713_v22 = vld [vmem:[#allocation7 + $0x180] sm:$0xff] }
  0x4a   :  { %1121 = vmatpush3.msra.mxu1 %v183_v23  ;;  %1083 = vmatprep.subr.mxu0 %v287_v24  ;;  %v832_v23 = vld [vmem:[#allocation8 + $0x78] sm:$0xff] }
  0x4b   :  { %1122 = vmatprep.subr.mxu1 %v182_v25  ;;  %1084 = vmatpush3.msra.mxu0 %v287_v24 }
  0x4c   :  { %1123 = vmatpush3.msra.mxu1 %v182_v25  ;;  %1085 = vmatprep.subr.mxu0 %v286_v26 }
  0x4d   :  { %1124 = vmatprep.subr.mxu1 %v181_v27  ;;  %1086 = vmatpush3.msra.mxu0 %v286_v26 }
  0x4e   :  { %1125 = vmatpush3.msra.mxu1 %v181_v27  ;;  %1087 = vmatprep.subr.mxu0 %v285_v28 }
  0x4f   :  { %1126 = vmatprep.subr.mxu1 %v180_v29  ;;  %1088 = vmatpush3.msra.mxu0 %v285_v28 }
  0x50   :  { %1127 = vmatpush3.msra.mxu1 %v180_v29  ;;  %1089 = vmatprep.subr.mxu0 %v284_v30 }
  0x51   :  { %1128 = vmatprep.subr.mxu1 %v179_v31  ;;  %1090 = vmatpush3.msra.mxu0 %v284_v30 }
  0x52   :  { %1129 = vmatpush3.msra.mxu1 %v179_v31  ;;  %1091 = vmatprep.subr.mxu0 %v283_v32 }
  0x53   :  { %1130 = vmatprep.subr.mxu1 %v178_v33  ;;  %1092 = vmatpush3.msra.mxu0 %v283_v32 }
  0x54   :  { %1131 = vmatpush3.msra.mxu1 %v178_v33  ;;  %1093 = vmatprep.subr.mxu0 %v282_v34 }
  0x55   :  { %1132 = vmatprep.subr.mxu1 %v177_v35  ;;  %1094 = vmatpush3.msra.mxu0 %v282_v34 }
  0x56   :  { %1133 = vmatpush3.msra.mxu1 %v177_v35  ;;  %1095 = vmatprep.subr.mxu0 %v281_v36 }
  0x57   :  { %1096 = vmatpush3.msra.mxu0 %v281_v36  ;;  %1144 = vmatprep.subr.mxu1 %v548_v38  ;;  %v831_v36 = vld [vmem:[#allocation8 + $0x70] sm:$0xff] }
  0x58   :  { %1097 = vmatprep.subr.mxu0 %v280_v37 }
  0x59   :  { %1098 = vmatpush3.msra.mxu0 %v280_v37 }
  0x5a   :  { %1137 = vmatprep.subr.mxu0 %v1442_v0 }
  0xf6   :  { %v1059_v40 = vpop.f32.mrf.mxu0 }
  0xf7   :  { %v172_v41 = vadd.f32 %v1059_v40, %v1462_v39 }
  0xf8   :  { %v166_v42 = vpop.f32.mrf.mxu0 }
  0xf9   :  { %v167_v43 = vadd.f32 %v1462_v39, %v166_v42  ;;  %v176_v46 = vmax.f32 %v172_v41, 0.0  ;;  %v829_v41 = vld [vmem:[#allocation8 + $0x60] sm:$0xff]  ;;  %v828_v42 = vld [vmem:[#allocation8 + $0x58] sm:$0xff] }
  0xfa   :  { %v1066_v44 = vpop.f32.mrf.mxu0 }
  0xfb   :  { %v175_v45 = vmax.f32 %v167_v43, 0.0  ;;  %v274_v47 = vadd.f32 %v1066_v44, %v1462_v39  ;;  %v827_v43 = vld [vmem:[#allocation8 + $0x50] sm:$0xff]  ;;  %v825_v44 = vld [vmem:[#allocation8 + $0x40] sm:$0xff] }
  0xfc   :  { %v268_v48 = vpop.f32.mrf.mxu0 }
  0xfd   :  { %v269_v49 = vadd.f32 %v1462_v39, %v268_v48  ;;  %1134 = vmatprep.mubr.f32.mxu1 %v175_v45  ;;  %v278_v53 = vmax.f32 %v274_v47, 0.0  ;;  %v824_v45 = vld [vmem:[#allocation8 + $0x38] sm:$0xff]  ;;  %v822_v47 = vld [vmem:[#allocation8 + $0x28] sm:$0xff]  ;;  %v821_v48 = vld [vmem:[#allocation8 + $0x20] sm:$0xff] }
  0xfe   :  { %1135 = vmatmul.mubr.f32.vlgmr.msra.gmra.mxu1 %v176_v46  ;;  %v823_v46 = vld [vmem:[#allocation8 + $0x30] sm:$0xff] }
  0xff   :  { %v277_v51 = vmax.f32 %v269_v49, 0.0  ;;  %1145 = vmatpush3.msra.mxu1 %v548_v38  ;;  %v830_v38 = vld [vmem:[#allocation8 + $0x68] sm:$0xff]  ;;  %v820_v49 = vld [vmem:[#allocation8 + $0x18] sm:$0xff] }
 0x100   :  { %1146 = vmatprep.subr.mxu1 %v547_v50 }
 0x101   :  { %1099 = vmatprep.mubr.f32.mxu0 %v277_v51  ;;  %1147 = vmatpush3.msra.mxu1 %v547_v50  ;;  %v819_v50 = vld [vmem:[#allocation8 + $0x10] sm:$0xff]  ;;  %v818_v51 = vld [vmem:[#allocation8 + $0x8] sm:$0xff] }
 0x102   :  { %1100 = vmatmul.mubr.f32.vlgmr.msra.gmra.mxu0 %v278_v53  ;;  %1148 = vmatprep.subr.mxu1 %v546_v52 }
 0x103   :  { %1138 = vmatpush3.msra.mxu0 %v1442_v0  ;;  %1141 = vmatprep.mubr.msk.f32.mxu0 %vm93_vm0, %v447_v54 }
 0x104   :  { %1139 = vmatprep.subr.mxu0 %v1444_v1  ;;  %1149 = vmatpush3.msra.mxu1 %v546_v52  ;;  %v817_v52 = vld [vmem:[#allocation8] sm:$0xff] }
 0x105   :  { %1140 = vmatpush3.msra.mxu0 %v1444_v1  ;;  %1150 = vmatprep.subr.mxu1 %v545_v55 }
 0x106   :  { %1142 = vmatmul.mubr.msk.f32.vlgmr.msra.gmra.mxu0 %vm93_vm0, %v448_v56  ;;  %1179 = vmatprep.subr.mxu0 %v1442_v0 }
 0x107   :  { %1180 = vmatpush3.msra.mxu0 %v1442_v0  ;;  %1183 = vmatprep.mubr.msk.f32.mxu0 %vm93_vm0, %v627_v57  ;;  %v725_v0 = vld [vmem:[#allocation7 + $0x1e0] sm:$0xff] }
 0x108   :  { %1181 = vmatprep.subr.mxu0 %v1444_v1  ;;  %1151 = vmatpush3.msra.mxu1 %v545_v55 }
 0x109   :  { %1182 = vmatpush3.msra.mxu0 %v1444_v1  ;;  %1152 = vmatprep.subr.mxu1 %v544_v58  ;;  %v724_v1 = vld [vmem:[#allocation7 + $0x1d8] sm:$0xff] }
 0x10a   :  { %1184 = vmatmul.mubr.msk.f32.vlgmr.msra.gmra.mxu0 %vm93_vm0, %v628_v59  ;;  %1186 = vmatprep.subr.mxu0 %v728_v60 }
 0x10b   :  { %1187 = vmatpush3.msra.mxu0 %v728_v60  ;;  %1153 = vmatpush3.msra.mxu1 %v544_v58 }
 0x10c   :  { %1188 = vmatprep.subr.mxu0 %v727_v61  ;;  %1154 = vmatprep.subr.mxu1 %v543_v62 }
 0x10d   :  { %1189 = vmatpush3.msra.mxu0 %v727_v61  ;;  %1155 = vmatpush3.msra.mxu1 %v543_v62 }
 0x10e   :  { %1190 = vmatprep.subr.mxu0 %v726_v63  ;;  %1156 = vmatprep.subr.mxu1 %v542_v2 }
 0x10f   :  { %1191 = vmatpush3.msra.mxu0 %v726_v63  ;;  %1157 = vmatpush3.msra.mxu1 %v542_v2  ;;  %v945_v63 = vld [vmem:[%s1505_s4] ss:$0 sm:$0xff]  ;;  %s1343_s4 = scalar_lea.vmem %s923_s25, 256 }
 0x110   :  { %1192 = vmatprep.subr.mxu0 %v725_v0  ;;  %1158 = vmatprep.subr.mxu1 %v541_v3  ;;  %p1344_p6 = scmp.ne.s32.totalorder %s923_s25, %s1343_s4  ;;  %p1349_p8 = scmp.lt.s32.totalorder %s1343_s4, %s1343_s4 }
 0x111   :  { %1193 = vmatpush3.msra.mxu0 %v725_v0  ;;  %1159 = vmatpush3.msra.mxu1 %v541_v3 }
 0x112   :  { %1194 = vmatprep.subr.mxu0 %v724_v1  ;;  %1160 = vmatprep.subr.mxu1 %v540_v5  ;;  %p1350_p9 = por %p1349_p8, %p1348_p7 }
 0x113   :  { %1195 = vmatpush3.msra.mxu0 %v724_v1  ;;  %1161 = vmatpush3.msra.mxu1 %v540_v5 }
 0x114   :  { %1196 = vmatprep.subr.mxu0 %v723_v4  ;;  %1162 = vmatprep.subr.mxu1 %v539_v7  ;;  %p1351_p10 = pnand %p1350_p9, %p1344_p6 }
 0x115   :  { %1197 = vmatpush3.msra.mxu0 %v723_v4  ;;  %1163 = vmatpush3.msra.mxu1 %v539_v7 }
 0x116   :  { %1198 = vmatprep.subr.mxu0 %v722_v6  ;;  %1164 = vmatprep.subr.mxu1 %v538_v9 }
 0x117   :  { %1199 = vmatpush3.msra.mxu0 %v722_v6  ;;  %1165 = vmatpush3.msra.mxu1 %v538_v9  ;;  %v946_v6 = vld [vmem:[%s1507_s6] ss:$0 sm:$0xff] }
 0x118   :  { %1200 = vmatprep.subr.mxu0 %v721_v8  ;;  %1166 = vmatprep.subr.mxu1 %v537_v11 }
 0x119   :  { %1201 = vmatpush3.msra.mxu0 %v721_v8  ;;  %1167 = vmatpush3.msra.mxu1 %v537_v11 }
 0x11a   :  { %1202 = vmatprep.subr.mxu0 %v720_v10  ;;  %1168 = vmatprep.subr.mxu1 %v536_v13 }
 0x11b   :  { %1203 = vmatpush3.msra.mxu0 %v720_v10  ;;  %1169 = vmatpush3.msra.mxu1 %v536_v13 }
 0x11c   :  { %1204 = vmatprep.subr.mxu0 %v719_v12  ;;  %1170 = vmatprep.subr.mxu1 %v535_v15 }
 0x11d   :  { %1205 = vmatpush3.msra.mxu0 %v719_v12  ;;  %1171 = vmatpush3.msra.mxu1 %v535_v15 }
 0x11e   :  { %1206 = vmatprep.subr.mxu0 %v718_v14  ;;  %1172 = vmatprep.subr.mxu1 %v534_v17 }
 0x11f   :  { %1207 = vmatpush3.msra.mxu0 %v718_v14  ;;  %1173 = vmatpush3.msra.mxu1 %v534_v17 }
 0x120   :  { %1208 = vmatprep.subr.mxu0 %v717_v16  ;;  %1174 = vmatprep.subr.mxu1 %v533_v19 }
 0x121   :  { %1209 = vmatpush3.msra.mxu0 %v717_v16  ;;  %1175 = vmatpush3.msra.mxu1 %v533_v19 }
 0x122   :  { %1210 = vmatprep.subr.mxu0 %v716_v18  ;;  %1221 = vmatprep.subr.mxu1 %v832_v23 }
 0x123   :  { %1211 = vmatpush3.msra.mxu0 %v716_v18 }
 0x124   :  { %1212 = vmatprep.subr.mxu0 %v715_v20 }
 0x125   :  { %1213 = vmatpush3.msra.mxu0 %v715_v20 }
 0x126   :  { %1214 = vmatprep.subr.mxu0 %v714_v21 }
 0x127   :  { %1215 = vmatpush3.msra.mxu0 %v714_v21 }
 0x128   :  { %1216 = vmatprep.subr.mxu0 %v713_v22 }
 0x129   :  { %1217 = vmatpush3.msra.mxu0 %v713_v22 }
 0x1be   :  { %v1136_v53 = vpop.f32.mrf.mxu1 }
 0x1c0   :  { %v437_v54 = vpop.f32.mrf.mxu1 }
 0x1c2   :  { %v1479_v24 = vpop.f32.mrf.mxu0 }
 0x1c3   :  { %v443_v56 = vadd.f32 %v1136_v53, %v1479_v24 }
 0x1c4   :  { %v1481_v25 = vpop.f32.mrf.mxu0 }
 0x1c5   :  { %v438_v58 = vadd.f32 %v437_v54, %v1481_v25 }
 0x1c6   :  { %v1143_v26 = vpop.f32.mrf.mxu0 }
 0x1c7   :  { %v527_v27 = vadd.f32 %v1143_v26, %v1462_v39 }
 0x1c8   :  { %v521_v28 = vpop.f32.mrf.mxu0 }
 0x1c9   :  { %v522_v29 = vadd.f32 %v1462_v39, %v521_v28  ;;  %v531_v32 = vmax.f32 %v527_v27, 0.0 }
 0x1ca   :  { %v1185_v30 = vpop.f32.mrf.mxu0 }
 0x1cb   :  { %v530_v31 = vmax.f32 %v522_v29, 0.0  ;;  %v707_v33 = vadd.f32 %v1185_v30, %v1462_v39 }
 0x1cc   :  { %v701_v34 = vpop.f32.mrf.mxu0 }
 0x1cd   :  { %v702_v35 = vadd.f32 %v1462_v39, %v701_v34  ;;  %1176 = vmatprep.mubr.f32.mxu1 %v530_v31  ;;  %v711_v40 = vmax.f32 %v707_v33, 0.0  ;;  %v826_v39 = vld [vmem:[#allocation8 + $0x48] sm:$0xff] }
 0x1ce   :  { %1177 = vmatmul.mubr.f32.vlgmr.msra.gmra.mxu1 %v531_v32 }
 0x1cf   :  { %v710_v37 = vmax.f32 %v702_v35, 0.0  ;;  %1222 = vmatpush3.msra.mxu1 %v832_v23 }
 0x1d0   :  { %1223 = vmatprep.subr.mxu1 %v831_v36 }
 0x1d1   :  { %1218 = vmatprep.mubr.f32.mxu0 %v710_v37  ;;  %1224 = vmatpush3.msra.mxu1 %v831_v36 }
 0x1d2   :  { %1219 = vmatmul.mubr.f32.vlgmr.msra.gmra.mxu0 %v711_v40  ;;  %1225 = vmatprep.subr.mxu1 %v830_v38 }
 0x1d3   :  { %1226 = vmatpush3.msra.mxu1 %v830_v38 }
 0x1d4   :  { %1227 = vmatprep.subr.mxu1 %v829_v41 }
 0x1d5   :  { %1228 = vmatpush3.msra.mxu1 %v829_v41 }
 0x1d6   :  { %1229 = vmatprep.subr.mxu1 %v828_v42 }
 0x1d7   :  { %1230 = vmatpush3.msra.mxu1 %v828_v42 }
 0x1d8   :  { %1231 = vmatprep.subr.mxu1 %v827_v43 }
 0x1d9   :  { %1232 = vmatpush3.msra.mxu1 %v827_v43 }
 0x1da   :  { %1233 = vmatprep.subr.mxu1 %v826_v39 }
 0x1db   :  { %1234 = vmatpush3.msra.mxu1 %v826_v39 }
 0x1dc   :  { %1235 = vmatprep.subr.mxu1 %v825_v44 }
 0x1dd   :  { %1236 = vmatpush3.msra.mxu1 %v825_v44 }
 0x1de   :  { %1237 = vmatprep.subr.mxu1 %v824_v45 }
 0x1df   :  { %1238 = vmatpush3.msra.mxu1 %v824_v45 }
 0x1e0   :  { %1239 = vmatprep.subr.mxu1 %v823_v46 }
 0x1e1   :  { %1240 = vmatpush3.msra.mxu1 %v823_v46 }
 0x1e2   :  { %1241 = vmatprep.subr.mxu1 %v822_v47 }
 0x1e3   :  { %1242 = vmatpush3.msra.mxu1 %v822_v47 }
 0x1e4   :  { %1243 = vmatprep.subr.mxu1 %v821_v48 }
 0x1e5   :  { %1244 = vmatpush3.msra.mxu1 %v821_v48 }
 0x1e6   :  { %1245 = vmatprep.subr.mxu1 %v820_v49 }
 0x1e7   :  { %1246 = vmatpush3.msra.mxu1 %v820_v49 }
 0x1e8   :  { %1247 = vmatprep.subr.mxu1 %v819_v50 }
 0x1e9   :  { %1248 = vmatpush3.msra.mxu1 %v819_v50 }
 0x1ea   :  { %1249 = vmatprep.subr.mxu1 %v818_v51 }
 0x1eb   :  { %1250 = vmatpush3.msra.mxu1 %v818_v51 }
 0x1ec   :  { %1251 = vmatprep.subr.mxu1 %v817_v52 }
 0x1ed   :  { %1252 = vmatpush3.msra.mxu1 %v817_v52 }
 0x28e   :  { %v1178_v55 = vpop.f32.mrf.mxu1 }
 0x28f   :  { %v625_v59 = vadd.f32 %v1178_v55, %v443_v56 }
 0x290   :  { %v615_v57 = vpop.f32.mrf.mxu1 }
 0x291   :  { %v624_v61 = vadd.f32 %v615_v57, %v438_v58 }
 0x292   :  { %v1220_v60 = vpop.f32.mrf.mxu0 }
 0x293   :  { %v805_v62 = vadd.f32 %v1220_v60, %v625_v59 }
 0x294   :  { %v795_v2 = vpop.f32.mrf.mxu0 }
 0x295   :  { %v804_v0 = vadd.f32 %v795_v2, %v624_v61  ;;  %v814_v3 = vadd.f32 %v945_v63, %v805_v62 }
 0x297   :  { %v813_v1 = vadd.f32 %v945_v63, %v804_v0  ;;  %v816_v5 = vmax.f32 %v814_v3, 0.0 }
 0x299   :  { %v815_v4 = vmax.f32 %v813_v1, 0.0 }
 0x29b   :  { %1253 = vmatprep.mubr.f32.mxu1 %v815_v4 }
 0x29c   :  { %1254 = vmatmul.mubr.f32.vlgmr.msra.gmra.mxu1 %v816_v5 }
 0x35c   :  { %v1255_v7 = vpop.f32.mrf.mxu1 }
 0x35d   :  { %v912_v8 = vadd.f32 %v1255_v7, %v946_v6 }
 0x35e   :  { %v906_v9 = vpop.f32.mrf.mxu1 }
 0x35f   :  { %916 = vst [vmem:[#allocation10 + $0x8] sm:$0xff] %v912_v8  ;;  %v907_v10 = vadd.f32 %v946_v6, %v906_v9 }
 0x361   :  { %915 = vst [vmem:[#allocation10] sm:$0xff] %v907_v10 }
 0x362   :  { %1354 = shalt.err (!%p1351_p10)
}
 0x363   :  { %928 = dma.vmem_to_hbm [thread:$0]  %s923_s25, 256, %s1508_s7, [#allocation4], %s1373_s29, %s1373_s29, %s1374_s30  }
 0x364   :  { %1369 = dma.done.wait [#allocation4], 256  }
 0x365   :  { %1370 = vsyncadd [#allocation4], 4294967040 }
 0x366   :  { %932 = vsyncpa [#allocation3], 1 }
 0x367   :  { %933 = vsyncpa [#allocation6], 1 }
 0x368   :  { %934 = vsyncpa [#allocation9], 1 }
 0x369   :  { %935 = vsyncpa [#allocation4], 1 }

</bundles_post_ra>
